<compile_context>
chip_gen: v7x
topology: tpu7x:2x2x1
jax: 0.10.0
libtpu: 0.0.40
codegen_flags: <defaults>
</compile_context>

<pallas_src>
import functools

import jax
import jax.numpy as jnp
from jax import lax
from jax.experimental import pallas as pl
from jax.experimental.pallas import tpu as pltpu


# ----------------------------------------------------------------------------
# Kernel
# ----------------------------------------------------------------------------
def _sdpa_kernel(q_ref, k_ref, v_ref, *rest, scale, has_mask, has_dist,
                 return_weights, matmul_dtype):
    i = 0
    mask_ref = rest[i] if has_mask else None
    i += int(has_mask)
    dist_ref = rest[i] if has_dist else None
    i += int(has_dist)
    out_ref = rest[i]
    w_ref = rest[i + 1] if return_weights else None

    mm_dtype = jnp.dtype(matmul_dtype) if matmul_dtype is not None else q_ref.dtype

    # Scale folded onto the small (TQ, Dk) q tile (cheaper than (TQ, Sk)).
    q = (q_ref[0, 0].astype(jnp.float32) * jnp.float32(scale)).astype(mm_dtype)
    k = k_ref[0, 0].astype(mm_dtype)

    # QK^T: contract Dk on both operands directly (no K transpose / XLU pass).
    scores = lax.dot_general(
        q, k,
        dimension_numbers=(((1,), (1,)), ((), ())),
        preferred_element_type=jnp.float32,
    )  # (TQ, Sk) f32

    # Original semantics: softmax(dist * (scaled_qk + mask * -1e9)).
    if has_mask:
        # Mask streamed in its native (narrow) dtype; cast + FMA on the VPU.
        scores = scores + mask_ref[0, 0].astype(jnp.float32) * jnp.float32(-1e9)
    if has_dist:
        scores = dist_ref[0].astype(jnp.float32) * scores

    # Numerically stable softmax over Sk (fully-masked rows -> uniform,
    # matching the reference).
    m = jnp.max(scores, axis=-1, keepdims=True)
    e = jnp.exp(scores - m)
    denom = jnp.sum(e, axis=-1, keepdims=True)
    w = e * pl.reciprocal(denom, approx=False)

    if return_weights:
        w_ref[0, 0] = w.astype(w_ref.dtype)

    out = jnp.dot(w.astype(mm_dtype), v_ref[0, 0].astype(mm_dtype),
                  preferred_element_type=jnp.float32)
    out_ref[0, 0] = out.astype(out_ref.dtype)


# ----------------------------------------------------------------------------
# Tiling helpers
# ----------------------------------------------------------------------------
def _sublane_multiple(itemsize):
    if itemsize >= 4:
        return 8
    if itemsize == 2:
        return 16
    return 32


def _pick_q_tile(sq, itemsize, cap):
    """Largest q-tile <= cap that divides Sq with a legal sublane layout."""
    if sq <= cap:
        return sq
    mult = _sublane_multiple(itemsize)
    for req in (mult, 8):  # prefer dtype-native packing; 8 is the hard minimum
        for t in range(min(cap, sq), req - 1, -1):
            if sq % t == 0 and t % req == 0:
                return t
    return sq  # awkward (e.g. prime) Sq: no tiling rather than an illegal block


def _vmem_capacity_bytes():
    try:
        return int(pltpu.get_tpu_info().vmem_capacity_bytes)
    except Exception:
        return 64 * 1024 * 1024  # conservative (v7x per-TC)


# ----------------------------------------------------------------------------
# Wrapper
# ----------------------------------------------------------------------------
def scaled_dot_product_attention(query, key, value, mask=None, dist_matrix=None,
                                 dropout_rate=0.0, return_weights=True,
                                 matmul_dtype=None, weights_dtype=None,
                                 q_tile=None):
    """Pallas TPU ScaledDotProductAttention.forward (eval mode).

    Returns (attention_output, attention_weights); weights is None when
    return_weights=False.  matmul_dtype=jnp.bfloat16 enables bf16 MXU operands
    with f32 accumulation; weights_dtype=jnp.bfloat16 halves the weights
    writeback.  Defaults keep exact input-dtype semantics.
    """
    del dropout_rate  # nn.Dropout is identity in eval mode
    query = jnp.asarray(query)
    key = jnp.asarray(key)
    value = jnp.asarray(value)
    B, H, Sq, Dk = query.shape
    Sk = key.shape[2]
    Dv = value.shape[3]
    scale = 1.0 / float(Dk) ** 0.5

    has_mask = mask is not None
    has_dist = dist_matrix is not None

    # ---- mask: keep native narrow dtype, keep singleton dims at size 1 ------
    mask4 = None
    if has_mask:
        mask4 = jnp.asarray(mask)
        if mask4.dtype == jnp.bool_:
            mask4 = mask4.astype(jnp.int8)  # 1 B/elt DMA; bool refs are awkward
        while mask4.ndim < 4:
            mask4 = mask4[None]

    dist3 = jnp.asarray(dist_matrix) if has_dist else None

    out_dtype = query.dtype
    w_dtype = jnp.dtype(weights_dtype) if weights_dtype is not None else query.dtype

    # ---- generation-aware tiling / VMEM budget -------------------------------
    vmem_cap = _vmem_capacity_bytes()
    vmem_budget = max(vmem_cap - 16 * 1024 * 1024, 24 * 1024 * 1024)
    q_cap = q_tile if q_tile is not None else (512 if vmem_cap >= (100 << 20) else 256)
    q_item = jnp.dtype(query.dtype).itemsize
    k_item = jnp.dtype(key.dtype).itemsize
    v_item = jnp.dtype(value.dtype).itemsize

    def step_bytes(tq_):
        # Double-buffered per-step VMEM footprint estimate.
        b = 2 * tq_ * Dk * q_item
        b += 2 * Sk * (Dk * k_item + Dv * v_item)
        if has_mask:
            mq = tq_ if mask4.shape[2] == Sq else 1
            mk = Sk if mask4.shape[3] == Sk else 1
            b += 2 * mq * mk * jnp.dtype(mask4.dtype).itemsize
        if has_dist:
            b += 2 * tq_ * Sk * jnp.dtype(dist3.dtype).itemsize
        b += 2 * tq_ * Dv * jnp.dtype(out_dtype).itemsize
        if return_weights:
            b += 2 * tq_ * Sk * jnp.dtype(w_dtype).itemsize
        return b

    tq = _pick_q_tile(Sq, q_item, q_cap)
    # Auto-shrink TQ if the double-buffered footprint exceeds the VMEM budget.
    while step_bytes(tq) > vmem_budget:
        cand = None
        for req in (_sublane_multiple(q_item), 8):
            for t in range(tq // 2, req - 1, -1):
                if Sq % t == 0 and t % req == 0:
                    cand = t
                    break
            if cand is not None:
                break
        if cand is None or cand >= tq:
            break  # TODO(synk): flash-style Sk tiling for extreme Sk footprints
        tq = cand
    nq = Sq // tq

    # ---- grid ordering: simple HBM-traffic model (common factor B*Sk dropped)
    kv_row_bytes = Dk * k_item + Dv * v_item
    shared_score_bytes = 0
    if (has_mask and mask4.shape[1] == 1
            and mask4.shape[2] == Sq and mask4.shape[3] == Sk):
        shared_score_bytes += jnp.dtype(mask4.dtype).itemsize
    if has_dist:
        shared_score_bytes += jnp.dtype(dist3.dtype).itemsize
    if shared_score_bytes > 0:
        traffic_h_inner = Sq * shared_score_bytes + nq * H * kv_row_bytes
        traffic_q_inner = H * kv_row_bytes + H * Sq * shared_score_bytes
        h_inner = traffic_h_inner < traffic_q_inner
    else:
        h_inner = False  # K/V stay VMEM-resident across q-tiles

    if h_inner:
        grid = (B, nq, H)
        q_map = lambda b, qi, h: (b, h, qi, 0)
        kv_map = lambda b, qi, h: (b, h, 0, 0)
        dist_map = lambda b, qi, h: (b, qi, 0)
    else:
        grid = (B, H, nq)
        q_map = lambda b, h, qi: (b, h, qi, 0)
        kv_map = lambda b, h, qi: (b, h, 0, 0)
        dist_map = lambda b, h, qi: (b, qi, 0)

    inputs = [query, key, value]
    in_specs = [
        pl.BlockSpec((1, 1, tq, Dk), q_map),
        pl.BlockSpec((1, 1, Sk, Dk), kv_map),
        pl.BlockSpec((1, 1, Sk, Dv), kv_map),
    ]

    if has_mask:
        mb, mh, mq, mk = mask4.shape
        bq = tq if mq == Sq else 1
        bk = Sk if mk == Sk else 1
        if h_inner:
            mask_map = lambda b, qi, h: (b if mb == B else 0,
                                         h if mh == H else 0,
                                         qi if mq == Sq else 0, 0)
        else:
            mask_map = lambda b, h, qi: (b if mb == B else 0,
                                         h if mh == H else 0,
                                         qi if mq == Sq else 0, 0)
        inputs.append(mask4)
        in_specs.append(pl.BlockSpec((1, 1, bq, bk), mask_map))

    if has_dist:
        inputs.append(dist3)
        in_specs.append(pl.BlockSpec((1, tq, Sk), dist_map))

    out_shapes = [jax.ShapeDtypeStruct((B, H, Sq, Dv), out_dtype)]
    out_specs = [pl.BlockSpec((1, 1, tq, Dv), q_map)]
    if return_weights:
        out_shapes.append(jax.ShapeDtypeStruct((B, H, Sq, Sk), w_dtype))
        out_specs.append(pl.BlockSpec((1, 1, tq, Sk), q_map))

    vmem_limit = int(min(vmem_budget, max(2 * step_bytes(tq), 32 << 20)))

    kernel = functools.partial(
        _sdpa_kernel, scale=scale, has_mask=has_mask, has_dist=has_dist,
        return_weights=return_weights, matmul_dtype=matmul_dtype)

    grid_spec = pltpu.PrefetchScalarGridSpec(
        num_scalar_prefetch=0,
        grid=grid,
        in_specs=in_specs,
        out_specs=out_specs,
    )

    results = pl.pallas_call(
        kernel,
        grid_spec=grid_spec,
        out_shape=tuple(out_shapes),
        compiler_params=pltpu.CompilerParams(
            # No cross-step dependence (every output block written exactly
            # once), so all axes are safe to shard across TensorCores (v7x).
            dimension_semantics=("parallel", "parallel", "parallel"),
            vmem_limit_bytes=vmem_limit,
        ),
    )(*inputs)

    if return_weights:
        out, weights = results
        return out, weights
    return results[0], None


# ----------------------------------------------------------------------------
# Pure-JAX reference (mirrors the PyTorch forward)
# ----------------------------------------------------------------------------
def _reference(query, key, value, mask, dist_matrix):
    Dk = key.shape[-1]
    scale = 1.0 / jnp.sqrt(jnp.float32(Dk))
    scores = jnp.einsum("bhqd,bhkd->bhqk", query, key) * scale
    if mask is not None:
        scores = scores + mask * (-1000000000.0)
    if dist_matrix is not None:
        scores = dist_matrix[:, None, :, :] * scores
    w = jax.nn.softmax(scores, axis=-1)
    out = jnp.einsum("bhqk,bhkd->bhqd", w, value)
    return out, w


if __name__ == "__main__":
    B, H, S, D = 2, 4, 16, 16
    rng = jax.random.PRNGKey(0)
    kq, kk, kv, km, kd = jax.random.split(rng, 5)

    query = jax.random.normal(kq, (B, H, S, D), jnp.float32)
    key = jax.random.normal(kk, (B, H, S, D), jnp.float32)
    value = jax.random.normal(kv, (B, H, S, D), jnp.float32)
    # binary mask (1 = masked out), same convention as the PyTorch module
    mask = (jax.random.uniform(km, (B, 1, S, S)) > 0.8).astype(jnp.float32)
    dist = jax.random.uniform(kd, (B, S, S), jnp.float32) + 0.5

    ref_out, ref_w = _reference(query, key, value, mask, dist)

    # 1) Exact-precision default path: mask + dist, weights returned.
    out, weights = scaled_dot_product_attention(query, key, value, mask, dist,
                                                dropout_rate=0.1)
    jax.block_until_ready((out, weights))
    assert jnp.allclose(out, ref_out, atol=1e-4, rtol=1e-4), "output mismatch"
    assert jnp.allclose(weights, ref_w, atol=1e-4, rtol=1e-4), "weights mismatch"

    # 2) No-mask / no-dist / no-weights path (q-tile-innermost, K/V resident).
    out2, w2 = scaled_dot_product_attention(query, key, value, None, None,
                                            return_weights=False)
    jax.block_until_ready(out2)
    ref_out2, _ = _reference(query, key, value, None, None)
    assert w2 is None
    assert jnp.allclose(out2, ref_out2, atol=1e-4, rtol=1e-4), "no-mask mismatch"

    # 3) Bandwidth-optimized path: bf16 MXU operands + bf16 weights writeback.
    out3, w3 = scaled_dot_product_attention(
        query, key, value, mask, dist,
        matmul_dtype=jnp.bfloat16, weights_dtype=jnp.bfloat16)
    jax.block_until_ready((out3, w3))
    assert jnp.allclose(out3, ref_out, atol=3e-2, rtol=3e-2), "bf16 out mismatch"
    assert jnp.allclose(w3.astype(jnp.float32), ref_w, atol=3e-2, rtol=3e-2), \
        "bf16 weights mismatch"

    # 4) Narrow (bool -> int8) mask DMA path.
    out4, _ = scaled_dot_product_attention(
        query, key, value, mask.astype(bool), dist, return_weights=False)
    jax.block_until_ready(out4)
    assert jnp.allclose(out4, ref_out, atol=1e-4, rtol=1e-4), "bool-mask mismatch"

    print("KERNEL_OK")
</pallas_src>

<mosaic_0001>
module attributes {stable_mosaic.version = 11 : i64} {
  func.func @_sdpa_kernel(%arg0: i32, %arg1: i32, %arg2: i32, %arg3: memref<1x1x16x16xf32, #tpu.memory_space<vmem>>, %arg4: memref<1x1x16x16xf32, #tpu.memory_space<vmem>>, %arg5: memref<1x1x16x16xf32, #tpu.memory_space<vmem>>, %arg6: memref<1x1x16x16xf32, #tpu.memory_space<vmem>>, %arg7: memref<1x16x16xf32, #tpu.memory_space<vmem>>, %arg8: memref<1x1x16x16xf32, #tpu.memory_space<vmem>>, %arg9: memref<1x1x16x16xf32, #tpu.memory_space<vmem>>) attributes {dimension_semantics = [#tpu.dimension_semantics<parallel>, #tpu.dimension_semantics<parallel>, #tpu.dimension_semantics<parallel>], iteration_bounds = array<i64: 2, 1, 4>, scalar_prefetch = 0 : i64, scratch_operands = 0 : i64, tpu.core_type = #tpu.core_type<tc>, window_params = [{transform_indices = @transform_0, window_bounds = array<i64: 1, 1, 16, 16>}, {transform_indices = @transform_1, window_bounds = array<i64: 1, 1, 16, 16>}, {transform_indices = @transform_2, window_bounds = array<i64: 1, 1, 16, 16>}, {transform_indices = @transform_3, window_bounds = array<i64: 1, 1, 16, 16>}, {transform_indices = @transform_4, window_bounds = array<i64: 1, 16, 16>}, {transform_indices = @transform_5, window_bounds = array<i64: 1, 1, 16, 16>}, {transform_indices = @transform_6, window_bounds = array<i64: 1, 1, 16, 16>}]} {
    %c0 = arith.constant 0 : index
    %c0_0 = arith.constant 0 : index
    %c0_1 = arith.constant 0 : index
    %c0_2 = arith.constant 0 : index
    %0 = vector.load %arg3[%c0, %c0_0, %c0_1, %c0_2] : memref<1x1x16x16xf32, #tpu.memory_space<vmem>>, vector<1x1x16x16xf32>
    %1 = vector.shape_cast %0 : vector<1x1x16x16xf32> to vector<16x16xf32>
    %cst = arith.constant 2.500000e-01 : f32
    %2 = vector.broadcast %cst : f32 to vector<16x16xf32>
    %3 = arith.mulf %1, %2 : vector<16x16xf32>
    %c0_3 = arith.constant 0 : index
    %c0_4 = arith.constant 0 : index
    %c0_5 = arith.constant 0 : index
    %c0_6 = arith.constant 0 : index
    %4 = vector.load %arg4[%c0_3, %c0_4, %c0_5, %c0_6] : memref<1x1x16x16xf32, #tpu.memory_space<vmem>>, vector<1x1x16x16xf32>
    %5 = vector.shape_cast %4 : vector<1x1x16x16xf32> to vector<16x16xf32>
    %cst_7 = arith.constant dense<0.000000e+00> : vector<16x16xf32>
    %6 = tpu.matmul %3, %5, %cst_7 {dimension_numbers = #tpu.dot_dimension_numbers<[1], [1], [0], [0], [0, 0, 1, 0], [], []>} : vector<16x16xf32>, vector<16x16xf32>, vector<16x16xf32> -> vector<16x16xf32>
    %c0_8 = arith.constant 0 : index
    %c0_9 = arith.constant 0 : index
    %c0_10 = arith.constant 0 : index
    %c0_11 = arith.constant 0 : index
    %7 = vector.load %arg6[%c0_8, %c0_9, %c0_10, %c0_11] : memref<1x1x16x16xf32, #tpu.memory_space<vmem>>, vector<1x1x16x16xf32>
    %8 = vector.shape_cast %7 : vector<1x1x16x16xf32> to vector<16x16xf32>
    %cst_12 = arith.constant -1.000000e+09 : f32
    %9 = vector.broadcast %cst_12 : f32 to vector<16x16xf32>
    %10 = arith.mulf %8, %9 : vector<16x16xf32>
    %11 = arith.addf %6, %10 : vector<16x16xf32>
    %c0_13 = arith.constant 0 : index
    %c0_14 = arith.constant 0 : index
    %c0_15 = arith.constant 0 : index
    %12 = vector.load %arg7[%c0_13, %c0_14, %c0_15] : memref<1x16x16xf32, #tpu.memory_space<vmem>>, vector<1x16x16xf32>
    %13 = vector.shape_cast %12 : vector<1x16x16xf32> to vector<16x16xf32>
    %14 = arith.mulf %13, %11 : vector<16x16xf32>
    %cst_16 = arith.constant dense<0xFF800000> : vector<16xf32>
    %15 = vector.multi_reduction <maximumf>, %14, %cst_16 [1] : vector<16x16xf32> to vector<16xf32>
    %16 = vector.shape_cast %15 : vector<16xf32> to vector<16x1xf32>
    %17 = vector.broadcast %16 : vector<16x1xf32> to vector<16x16xf32>
    %18 = arith.subf %14, %17 : vector<16x16xf32>
    %19 = math.exp %18 : vector<16x16xf32>
    %cst_17 = arith.constant dense<0.000000e+00> : vector<16xf32>
    %20 = vector.multi_reduction <add>, %19, %cst_17 [1] : vector<16x16xf32> to vector<16xf32>
    %21 = vector.shape_cast %20 : vector<16xf32> to vector<16x1xf32>
    %22 = tpu.reciprocal %21 : vector<16x1xf32> -> vector<16x1xf32>
    %23 = vector.broadcast %22 : vector<16x1xf32> to vector<16x16xf32>
    %24 = arith.mulf %19, %23 : vector<16x16xf32>
    %c0_18 = arith.constant 0 : index
    %c0_19 = arith.constant 0 : index
    %c0_20 = arith.constant 0 : index
    %c0_21 = arith.constant 0 : index
    %25 = vector.load %arg9[%c0_18, %c0_19, %c0_20, %c0_21] : memref<1x1x16x16xf32, #tpu.memory_space<vmem>>, vector<1x1x16x16xf32>
    %26 = vector.shape_cast %25 : vector<1x1x16x16xf32> to vector<16x16xf32>
    %27 = vector.shape_cast %24 : vector<16x16xf32> to vector<1x1x16x16xf32>
    tpu.vector_store %arg9[%c0_18, %c0_19, %c0_20, %c0_21], %27 {strides = array<i32>} : memref<1x1x16x16xf32, #tpu.memory_space<vmem>>, vector<1x1x16x16xf32>,
    %c0_22 = arith.constant 0 : index
    %c0_23 = arith.constant 0 : index
    %c0_24 = arith.constant 0 : index
    %c0_25 = arith.constant 0 : index
    %28 = vector.load %arg5[%c0_22, %c0_23, %c0_24, %c0_25] : memref<1x1x16x16xf32, #tpu.memory_space<vmem>>, vector<1x1x16x16xf32>
    %29 = vector.shape_cast %28 : vector<1x1x16x16xf32> to vector<16x16xf32>
    %cst_26 = arith.constant dense<0.000000e+00> : vector<16x16xf32>
    %30 = tpu.matmul %24, %29, %cst_26 {dimension_numbers = #tpu.dot_dimension_numbers<[1], [0], [0], [1], [0, 0, 1, 1], [], []>} : vector<16x16xf32>, vector<16x16xf32>, vector<16x16xf32> -> vector<16x16xf32>
    %c0_27 = arith.constant 0 : index
    %c0_28 = arith.constant 0 : index
    %c0_29 = arith.constant 0 : index
    %c0_30 = arith.constant 0 : index
    %31 = vector.load %arg8[%c0_27, %c0_28, %c0_29, %c0_30] : memref<1x1x16x16xf32, #tpu.memory_space<vmem>>, vector<1x1x16x16xf32>
    %32 = vector.shape_cast %31 : vector<1x1x16x16xf32> to vector<16x16xf32>
    %33 = vector.shape_cast %30 : vector<16x16xf32> to vector<1x1x16x16xf32>
    tpu.vector_store %arg8[%c0_27, %c0_28, %c0_29, %c0_30], %33 {strides = array<i32>} : memref<1x1x16x16xf32, #tpu.memory_space<vmem>>, vector<1x1x16x16xf32>,
    return
  }
  func.func @transform_0(%arg0: i32, %arg1: i32, %arg2: i32) -> (i32, i32, i32, i32) {
    %c0_i32 = arith.constant 0 : i32
    %c0_i32_0 = arith.constant 0 : i32
    return %arg0, %arg2, %arg1, %c0_i32 : i32, i32, i32, i32
  }
  func.func @transform_1(%arg0: i32, %arg1: i32, %arg2: i32) -> (i32, i32, i32, i32) {
    %c0_i32 = arith.constant 0 : i32
    %c0_i32_0 = arith.constant 0 : i32
    %c0_i32_1 = arith.constant 0 : i32
    return %arg0, %arg2, %c0_i32, %c0_i32_0 : i32, i32, i32, i32
  }
  func.func @transform_2(%arg0: i32, %arg1: i32, %arg2: i32) -> (i32, i32, i32, i32) {
    %c0_i32 = arith.constant 0 : i32
    %c0_i32_0 = arith.constant 0 : i32
    %c0_i32_1 = arith.constant 0 : i32
    return %arg0, %arg2, %c0_i32, %c0_i32_0 : i32, i32, i32, i32
  }
  func.func @transform_3(%arg0: i32, %arg1: i32, %arg2: i32) -> (i32, i32, i32, i32) {
    %c0_i32 = arith.constant 0 : i32
    %c0_i32_0 = arith.constant 0 : i32
    %c0_i32_1 = arith.constant 0 : i32
    return %arg0, %c0_i32, %arg1, %c0_i32_0 : i32, i32, i32, i32
  }
  func.func @transform_4(%arg0: i32, %arg1: i32, %arg2: i32) -> (i32, i32, i32) {
    %c0_i32 = arith.constant 0 : i32
    %c0_i32_0 = arith.constant 0 : i32
    return %arg0, %arg1, %c0_i32 : i32, i32, i32
  }
  func.func @transform_5(%arg0: i32, %arg1: i32, %arg2: i32) -> (i32, i32, i32, i32) {
    %c0_i32 = arith.constant 0 : i32
    %c0_i32_0 = arith.constant 0 : i32
    return %arg0, %arg2, %arg1, %c0_i32 : i32, i32, i32, i32
  }
  func.func @transform_6(%arg0: i32, %arg1: i32, %arg2: i32) -> (i32, i32, i32, i32) {
    %c0_i32 = arith.constant 0 : i32
    %c0_i32_0 = arith.constant 0 : i32
    return %arg0, %arg2, %arg1, %c0_i32 : i32, i32, i32, i32
  }
}

</mosaic_0001>

<bundles_post_ra>
// kernel: tpu_custom_call.1
= control target key start
LH: loop header
LB: loop body
LE: loop exit
PB: predicated region body
PF: predicated region fallthrough
CT: control target
= control target key end

     0   :  { %s2074_s0 = inlined_call_operand.hbm [shape: f32[2,4,16,16], index: 0, kind: input, shape index: {}]   ;;  %s2075_s1 = inlined_call_operand.hbm [shape: f32[2,4,16,16], index: 1, kind: input, shape index: {}]   ;;  %s2076_s2 = inlined_call_operand.hbm [shape: f32[2,4,16,16], index: 2, kind: input, shape index: {}]   ;;  %s2077_s3 = inlined_call_operand.hbm [shape: f32[2,1,16,16], index: 3, kind: input, shape index: {}]   ;;  %s2078_s4 = inlined_call_operand.hbm [shape: f32[2,16,16], index: 4, kind: input, shape index: {}]   ;;  %s2079_s5 = inlined_call_operand.hbm [shape: f32[2,4,16,16], index: 5, kind: output, shape index: {0}]   ;;  %s2080_s6 = inlined_call_operand.hbm [shape: f32[2,4,16,16], index: 6, kind: output, shape index: {1}]  }
   0x1   :  { %2112 = sst [smem:[#allocation33_spill]] %s2075_s1 }
   0x2   :  { %2113 = sst [smem:[#allocation34_spill]] %s2077_s3 }
   0x3   :  { %2114 = sst [smem:[#allocation35_spill]] %s2079_s5 }
   0x4   :  { %2115 = sst [smem:[#allocation36_spill]] %s2080_s6 }
   0x5   :  { %12 = vsyncpa [#allocation3], 0 }
   0x6   :  { %14 = vsyncpa [#allocation3 + $0x1], 0 }
   0x7   :  { %15 = vsyncpa [#allocation6], 0 }
   0x8   :  { %17 = vsyncpa [#allocation6 + $0x1], 0 }
   0x9   :  { %18 = vsyncpa [#allocation9], 0 }
   0xa   :  { %20 = vsyncpa [#allocation9 + $0x1], 0 }
   0xb   :  { %21 = vsyncpa [#allocation4], 0 }
   0xc   :  { %23 = vsyncpa [#allocation4 + $0x1], 0 }
   0xd   :  { %24 = vsyncpa [#allocation13], 0 }
   0xe   :  { %26 = vsyncpa [#allocation13 + $0x1], 0  ;;  %s1556_s21 = smov 0   ;;  %s1558_s22 = smov 0  }
   0xf   :  { %s1560_s23 = smov 0   ;;  %s1562_s24 = smov 0  }
  0x10   :  { %s1564_s25 = smov 0   ;;  %s1566_s26 = smov 0  }
  0x11   :  { %s1568_s27 = smov 0   ;;  %s1570_s28 = smov 0  }
  0x12   :  { %s1572_s29 = smov 0   ;;  %s1574_s30 = smov 0  }
  0x13   :  { %s1576_s7 = smov 0  }
  0x14 LB: > { %2116 = sst [smem:[#allocation19_spill]] %s1472_s22  ;;  %s1612_s8 = sadd.s32 4294967295, %s1508_s7   ;;  %s1508_s7 = sphi %s1576_s7, %s32_s7   ;;  %s1504_s30 = sphi %s1574_s30, %s2176_s30   ;;  %s1500_s29 = sphi %s1572_s29, %s2175_s29   ;;  %s1496_s28 = sphi %s1570_s28, %s2174_s28   ;;  %s1492_s27 = sphi %s1568_s27, %s2173_s27   ;;  %s1488_s26 = sphi %s1566_s26, %s2179_s26   ;;  %s1484_s25 = sphi %s1564_s25, %s2178_s25   ;;  %s1480_s24 = sphi %s1562_s24, %s2177_s24   ;;  %s1476_s23 = sphi %s1560_s23, %s2171_s23   ;;  %s1472_s22 = sphi %s1558_s22, %s2170_s22   ;;  %s1468_s21 = sphi %s1556_s21, %s2169_s21  }
  0x15   : > { %2117 = sst [smem:[#allocation20_spill]] %s1476_s23  ;;  %s978_s9 = sadd.s32 4294967294, %s1508_s7  }
  0x16   : > { %2118 = sst [smem:[#allocation21_spill]] %s1480_s24  ;;  %s44_s10 = sadd.s32 1, %s1500_s29 }
  0x17   : > { %2119 = sst [smem:[#allocation22_spill]] %s1492_s27  ;;  %s51_s11 = sadd.s32 1, %s1504_s30 }
  0x18   : > { %2120 = sst [smem:[#allocation23_spill]] %s1496_s28  ;;  %p45_p0 = scmp.ge.s32.totalorder %s44_s10, 4 }
  0x19   : > { %2121 = sst [smem:[#allocation24_spill]] %s1500_s29  ;;  %s62_s12 = sadd.s32 1, %s1488_s26 }
  0x1a   : > { %2122 = sst [smem:[#allocation25_spill]] %s1504_s30  ;;  %p69_p1 = scmp.ne.s32.totalorder %s1488_s26, %s1484_s25 }
  0x1b   : > { %p2093_p2 = scmp.eq.s32.totalorder %s1508_s7, 0  ;;  %s2181_s10 = smov (%p45_p0, %s44_s10), 0 }
  0x1c   : > { %2123 = sst [smem:[#allocation26_spill]] %s2181_s10  ;;  %s2183_s11 = smov (!%p45_p0, %s51_s11), %s1504_s30 }
  0x1d   : > { %s56_s13 = ssub.s32 %s1500_s29, %s2181_s10  ;;  %p1628_p3 = por %p2093_p2, %p69_p1 }
  0x1e   : > { %p53_p4 = scmp.ge.s32.totalorder %s2183_s11, 2  ;;  %p75_p5 = scmp.ne.s32.totalorder %s1484_s25, %s1480_s24 }
  0x1f   : > { %p2092_p6 = scmp.eq.s32.totalorder %s1612_s8, 0  ;;  %p215_p7 = scmp.eq.s32.totalorder %s1612_s8, 7 }
  0x20   : > { %s2185_s11 = smov (%p53_p4, %s2183_s11), 0  ;;  %p221_p10 = scmp.eq.s32.totalorder %s978_s9, 7 }
  0x21   : > { %2125 = sst [smem:[#allocation27_spill]] %s2185_s11  ;;  %p1640_p8 = por %p2092_p6, %p75_p5 }
  0x22   : > { %p1644_p9 = por %p215_p7, %p69_p1  ;;  %s1650_s17 = ssub.s32 %s1504_s30, %s2185_s11 }
  0x23   : > { %s2126_s15 = scalar_select %p1640_p8, 1, 0 }
  0x24   : > { %s2127_s16 = scalar_select %p1644_p9, 1, 0 }
  0x25   : > { %s57_s18 = sor.u32 %s56_s13, %s1650_s17  ;;  %p1654_p13 = por %p221_p10, %p75_p5 }
  0x26   : > { %2128 = sst [smem:[#allocation28_spill]] %s2127_s16  ;;  %p60_p12 = scmp.eq.s32.totalorder %s57_s18, 0 }
  0x27   : > { %s2129_s19 = scalar_select %p1654_p13, 1, 0 }
  0x28   : > { %p2091_p0 = scmp.lt.s32.totalorder %s1508_s7, 8  ;;  %s2087_s10 = sand.u32 1, %s1488_s26  }
  0x29   : > { %2130 = sst [smem:[#allocation29_spill]] %s2129_s19  ;;  %s982_s24 = sshll.u32 %s1500_s29, 1 }
  0x2a   : > { %s1660_s20 = scalar_select %p60_p12, %s1488_s26, %s62_s12  }
  0x2b   : > { %s1666_s11 = sshll.u32 %s2087_s10, 4  ;;  %s983_s9 = sshll.u32 %s1504_s30, 3 }
  0x2c   : > { %2131 = sst [smem:[#allocation30_spill]] %s1660_s20  ;;  %s283_s13 = sadd.s32 %s983_s9, %s982_s24 }
  0x2d   : > { %p1673_p1 = pnand %p2091_p0, %p1628_p3  ;;  %s1677_s19 = sshll.u32 %s283_s13, 7 }
  0x2e   : > { %s2094_s12 = sand.u32 1, %s1508_s7   ;;  %s2133_s1 = sld [smem:[#allocation33_spill]] }
  0x2f   : > { %s2132_s18 = scalar_select %p1673_p1, 1, 0 }
  0x30   : > { %s300_s24 = scalar_lea.vmem [#allocation5], %s1666_s11  ;;  %s1693_s9 = scalar_lea.sflag [#allocation6], %s2094_s12 }
  0x31   : > { %s309_s14 = sshll.u32 %s300_s24, 4  ;;  %p1699_p7 = pneg %p1673_p1  ;;  %s1688_s14 = int_to_ptr.vmem [resolvable:$true] %s309_s14 }
  0x34   : > { %s1684_s29 = scalar_lea.hbm %s2133_s1, %s1677_s19  ;;  %s1201_s10 = scalar_lea.hbm %s2133_s1, 2048 }
  0x35   : > { %s1196_s13 = scalar_lea.hbm %s1684_s29, 256  ;;  %p1202_p0 = scmp.lt.u32.totalorder %s1684_s29, %s2133_s1 }
  0x36   : > { %p1197_p5 = scmp.ne.s32.totalorder %s1684_s29, %s1196_s13  ;;  %p1203_p6 = scmp.lt.u32.totalorder %s1201_s10, %s1196_s13 }
  0x37   : > { %p1205_p11 = scmp.lt.u32.totalorder %s1196_s13, %s1684_s29 }
  0x38   : > { %p1199_p10 = pnand %p1699_p7, %p1197_p5  ;;  %p1204_p2 = por %p1203_p6, %p1202_p0 }
  0x3a   : > { %p1200_p12 = pneg %p1199_p10  ;;  %p1206_p3 = por %p1205_p11, %p1204_p2 }
  0x3c   : > { %p1207_p4 = pnand %p1206_p3, %p1200_p12 }
  0x3e   : > { %1210 = shalt.err (!%p1207_p4)
}
  0x3f   : > { %s1211_s12 = scalar_lea.vmem %s1688_s14, 256  ;;  %s1510_s20 = smov [#allocation5]  }
  0x40   : > { %p1212_p5 = scmp.ne.s32.totalorder %s1688_s14, %s1211_s12  ;;  %s1216_s24 = sshll.u32 %s1510_s20, 4  ;;  %s1217_s24 = int_to_ptr.vmem [resolvable:$false] %s1216_s24 }
  0x41   : > { %s1218_s6 = scalar_lea.vmem %s1217_s24, 512  ;;  %p1219_p9 = scmp.lt.s32.totalorder %s1688_s14, %s1217_s24 }
  0x42   : > { %p1214_p10 = pnand %p1212_p5, %p1699_p7  ;;  %p1220_p8 = scmp.lt.s32.totalorder %s1218_s6, %s1211_s12 }
  0x44   : > { %p1215_p13 = pneg %p1214_p10  ;;  %p1221_p6 = por %p1220_p8, %p1219_p9 }
  0x46   : > { %p1222_p0 = pnand %p1221_p6, %p1215_p13 }
  0x48   : > { %1225 = shalt.err (!%p1222_p0)
}
  0x49   : > { %s2097_s10 = smov 128   ;;  %s2099_s16 = smov 8  }
  0x4a   : > { %1077 = dma.hbm_to_vmem [thread:$0]  (!%p1673_p1), %s1684_s29, 256, %s1688_s14, %s1693_s9, %s2097_s10, %s2097_s10, %s2099_s16  }
  0x4b   : > { %p2135_p2 = scmp.lt.s32.totalorder %s1508_s7, 9  ;;  %p2136_p8 = scmp.ge.s32.totalorder %s1508_s7, 1 }
  0x4c   : > { %s146_s13 = sadd.s32 1, %s1476_s23  ;;  %p2138_p11 = scmp.eq.s32.totalorder %s1650_s17, 0 }
  0x4d   : > { %p1730_p9 = pnand %p2136_p8, %p2135_p2  ;;  %p153_p13 = scmp.ne.s32.totalorder %s1476_s23, %s1472_s22 }
  0x4e   : > { %s1738_s20 = scalar_select %p2138_p11, %s1476_s23, %s146_s13  }
  0x4f   : > { %s2137_s12 = scalar_select %p1730_p9, 1, 0 }
  0x50   : > { %2139 = sst [smem:[#allocation31_spill]] %s1738_s20  ;;  %p159_p3 = scmp.ne.s32.totalorder %s1472_s22, %s1468_s21 }
  0x51   : > { %s344_s24 = sand.u32 1, %s1476_s23   ;;  %p2140_p4 = scmp.eq.s32.totalorder %s1508_s7, 0 }
  0x52   : > { %p2141_p5 = scmp.eq.s32.totalorder %s1612_s8, 0  ;;  %s1753_s29 = sshll.u32 %s344_s24, 4 }
  0x53   : > { %p155_p12 = por %p153_p13, %p2140_p4  ;;  %s1023_s14 = sshll.u32 %s1504_s30, 8 }
  0x54   : > { %p1749_p10 = por %p159_p3, %p2141_p5  ;;  %s2144_s3 = sld [smem:[#allocation34_spill]] }
  0x55   : > { %s346_s21 = scalar_lea.vmem [#allocation8], %s1753_s29  ;;  %p2145_p6 = scmp.lt.s32.totalorder %s1508_s7, 8 }
  0x56   : > { %s2142_s6 = scalar_select %p1749_p10, 1, 0 }
  0x57   : > { %s355_s13 = sshll.u32 %s346_s21, 4  ;;  %p1764_p0 = pnand %p2145_p6, %p155_p12  ;;  %s1768_s13 = int_to_ptr.vmem [resolvable:$true] %s355_s13 }
  0x58   : > { %2143 = sst [smem:[#allocation32_spill]] %s2142_s6  ;;  %s1773_s10 = scalar_lea.hbm %s2078_s4, %s1023_s14 }
  0x59   : > { %s2146_s1 = scalar_select %p1764_p0, 1, 0 }
  0x5a   : > { %s1759_s17 = scalar_lea.hbm %s2144_s3, %s1023_s14  ;;  %s2147_s16 = sand.u32 1, %s1508_s7  }
  0x5b   : > { %s1777_s20 = scalar_lea.sflag [#allocation9], %s2147_s16  ;;  %s1226_s23 = scalar_lea.hbm %s1759_s17, 256 }
  0x5c   : > { %p1227_p2 = scmp.ne.s32.totalorder %s1759_s17, %s1226_s23  ;;  %p2109_p8 = pneg %p1764_p0 }
  0x5d   : > { %s1231_s27 = scalar_lea.hbm %s2144_s3, 512  ;;  %p1232_p3 = scmp.lt.u32.totalorder %s1759_s17, %s2144_s3 }
  0x5e   : > { %p1229_p11 = pnand %p2109_p8, %p1227_p2  ;;  %p1233_p4 = scmp.lt.u32.totalorder %s1231_s27, %s1226_s23 }
  0x5f   : > { %p1235_p5 = scmp.lt.u32.totalorder %s1226_s23, %s1759_s17 }
  0x60   : > { %p1230_p13 = pneg %p1229_p11  ;;  %p1234_p12 = por %p1233_p4, %p1232_p3 }
  0x62   : > { %p1236_p6 = por %p1235_p5, %p1234_p12 }
  0x64   : > { %p1237_p10 = pnand %p1236_p6, %p1230_p13 }
  0x66   : > { %1240 = shalt.err (!%p1237_p10)
}
  0x67   : > { %s1241_s30 = scalar_lea.vmem %s1768_s13, 256  ;;  %s1513_s28 = smov [#allocation8]  }
  0x68   : > { %p1242_p2 = scmp.ne.s32.totalorder %s1768_s13, %s1241_s30  ;;  %s1246_s14 = sshll.u32 %s1513_s28, 4  ;;  %s1247_s14 = int_to_ptr.vmem [resolvable:$false] %s1246_s14 }
  0x69   : > { %s1248_s22 = scalar_lea.vmem %s1247_s14, 512  ;;  %p1249_p1 = scmp.lt.s32.totalorder %s1768_s13, %s1247_s14 }
  0x6a   : > { %p1244_p11 = pnand %p1242_p2, %p2109_p8  ;;  %p1250_p3 = scmp.lt.s32.totalorder %s1248_s22, %s1241_s30 }
  0x6c   : > { %p1245_p9 = pneg %p1244_p11  ;;  %p1251_p4 = por %p1250_p3, %p1249_p1 }
  0x6e   : > { %p1252_p12 = pnand %p1251_p4, %p1245_p9 }
  0x70   : > { %1255 = shalt.err (!%p1252_p12)
}
  0x71   : > { %s2148_s23 = smov 8   ;;  %s2149_s27 = smov 128  }
  0x72   : > { %1083 = dma.hbm_to_vmem [thread:$0]  (!%p1764_p0), %s1759_s17, 256, %s1768_s13, %s1777_s20, %s2149_s27, %s2149_s27, %s2148_s23  }
  0x73   : > { %s369_s6 = scalar_lea.vmem [#allocation10], %s1753_s29  ;;  %s1815_s30 = scalar_lea.hbm %s2074_s0, %s1677_s19 }
  0x74   : > { %s378_s24 = sshll.u32 %s369_s6, 4  ;;  %s275_s28 = scalar_lea.vmem [#allocation2], %s1666_s11  ;;  %s1809_s24 = int_to_ptr.vmem [resolvable:$true] %s378_s24 }
  0x75   : > { %s286_s14 = sshll.u32 %s275_s28, 4  ;;  %s2150_s22 = sand.u32 1, %s1488_s26   ;;  %s1818_s14 = int_to_ptr.vmem [resolvable:$true] %s286_s14 }
  0x76   : > { %s1822_s3 = scalar_lea.sflag [#allocation3], %s2150_s22  ;;  %s1256_s29 = scalar_lea.hbm %s1815_s30, 256 }
  0x77   : > { %p1257_p1 = scmp.ne.s32.totalorder %s1815_s30, %s1256_s29  ;;  %s1261_s6 = scalar_lea.hbm %s2074_s0, 2048 }
  0x78   : > { %p1262_p13 = scmp.lt.u32.totalorder %s1815_s30, %s2074_s0  ;;  %p1263_p5 = scmp.lt.u32.totalorder %s1261_s6, %s1256_s29 }
  0x79   : > { %p1259_p9 = pnand %p1257_p1, %p1699_p7  ;;  %p1265_p2 = scmp.lt.u32.totalorder %s1256_s29, %s1815_s30 }
  0x7a   : > { %p1264_p6 = por %p1263_p5, %p1262_p13 }
  0x7b   : > { %p1260_p10 = pneg %p1259_p9 }
  0x7c   : > { %p1266_p11 = por %p1265_p2, %p1264_p6 }
  0x7e   : > { %p1267_p3 = pnand %p1266_p11, %p1260_p10 }
  0x80   : > { %1270 = shalt.err (!%p1267_p3)
}
  0x81   : > { %s1271_s28 = scalar_lea.vmem %s1818_s14, 256  ;;  %s1514_s22 = smov [#allocation2]  }
  0x82   : > { %p1272_p4 = scmp.ne.s32.totalorder %s1818_s14, %s1271_s28  ;;  %s1276_s17 = sshll.u32 %s1514_s22, 4  ;;  %s1277_s17 = int_to_ptr.vmem [resolvable:$false] %s1276_s17 }
  0x83   : > { %s1278_s13 = scalar_lea.vmem %s1277_s17, 512  ;;  %p1279_p9 = scmp.lt.s32.totalorder %s1818_s14, %s1277_s17 }
  0x84   : > { %p1274_p12 = pnand %p1272_p4, %p1699_p7  ;;  %p1280_p8 = scmp.lt.s32.totalorder %s1278_s13, %s1271_s28 }
  0x86   : > { %p1275_p1 = pneg %p1274_p12  ;;  %p1281_p13 = por %p1280_p8, %p1279_p9 }
  0x88   : > { %p1282_p5 = pnand %p1281_p13, %p1275_p1 }
  0x8a   : > { %1285 = shalt.err (!%p1282_p5)
}
  0x8b   : > { %p2151_p10 = scmp.ne.s32.totalorder %s2132_s18, 0  ;;  %s1853_s16 = scalar_lea.hbm %s2076_s2, %s1677_s19 }
  0x8c   : > { %s323_s21 = scalar_lea.vmem [#allocation7], %s1666_s11  ;;  %s1286_s22 = scalar_lea.hbm %s1853_s16, 256 }
  0x8d   : > { %1074 = dma.hbm_to_vmem [thread:$0]  (!%p2151_p10), %s1815_s30, 256, %s1818_s14, %s1822_s3, %s2149_s27, %s2149_s27, %s2148_s23  }
  0x8e   : > { %s332_s28 = sshll.u32 %s323_s21, 4  ;;  %p1287_p8 = scmp.ne.s32.totalorder %s1853_s16, %s1286_s22  ;;  %s1856_s28 = int_to_ptr.vmem [resolvable:$true] %s332_s28 }
  0x8f   : > { %s1291_s30 = scalar_lea.hbm %s2076_s2, 2048  ;;  %p1292_p11 = scmp.lt.u32.totalorder %s1853_s16, %s2076_s2 }
  0x90   : > { %p1289_p6 = pnand %p1287_p8, %p1699_p7  ;;  %p1293_p3 = scmp.lt.u32.totalorder %s1291_s30, %s1286_s22 }
  0x91   : > { %p1295_p12 = scmp.lt.u32.totalorder %s1286_s22, %s1853_s16 }
  0x92   : > { %p1290_p2 = pneg %p1289_p6  ;;  %p1294_p4 = por %p1293_p3, %p1292_p11 }
  0x94   : > { %p1296_p1 = por %p1295_p12, %p1294_p4 }
  0x96   : > { %p1297_p9 = pnand %p1296_p1, %p1290_p2 }
  0x98   : > { %1300 = shalt.err (!%p1297_p9)
}
  0x99   : > { %s1301_s11 = scalar_lea.vmem %s1856_s28, 256  ;;  %s1515_s13 = smov [#allocation7]  }
  0x9a   : > { %p1302_p13 = scmp.ne.s32.totalorder %s1856_s28, %s1301_s11  ;;  %s1306_s29 = sshll.u32 %s1515_s13, 4  ;;  %s1307_s29 = int_to_ptr.vmem [resolvable:$false] %s1306_s29 }
  0x9b   : > { %s1308_s6 = scalar_lea.vmem %s1307_s29, 512  ;;  %p1309_p6 = scmp.lt.s32.totalorder %s1856_s28, %s1307_s29 }
  0x9c   : > { %p1304_p5 = pnand %p1302_p13, %p1699_p7  ;;  %p1310_p0 = scmp.lt.s32.totalorder %s1308_s6, %s1301_s11 }
  0x9e   : > { %p1305_p8 = pneg %p1304_p5  ;;  %p1311_p11 = por %p1310_p0, %p1309_p6 }
  0xa0   : > { %p1312_p3 = pnand %p1311_p11, %p1305_p8 }
  0xa2   : > { %1315 = shalt.err (!%p1312_p3)
}
  0xa3   : > { %1080 = dma.hbm_to_vmem [thread:$0]  (!%p2151_p10), %s1853_s16, 256, %s1856_s28, %s1693_s9, %s2149_s27, %s2149_s27, %s2148_s23  }
  0xa4   : > { %s1316_s5 = scalar_lea.hbm %s1773_s10, 256  ;;  %p2152_p2 = scmp.ne.s32.totalorder %s2146_s1, 0 }
  0xa5   : > { %p1317_p7 = scmp.ne.s32.totalorder %s1773_s10, %s1316_s5  ;;  %s1321_s22 = scalar_lea.hbm %s2078_s4, 512 }
  0xa6   : > { %p2153_p0 = pneg %p2152_p2  ;;  %p1322_p1 = scmp.lt.u32.totalorder %s1773_s10, %s2078_s4 }
  0xa7   : > { %p1323_p9 = scmp.lt.u32.totalorder %s1321_s22, %s1316_s5  ;;  %p1325_p5 = scmp.lt.u32.totalorder %s1316_s5, %s1773_s10 }
  0xa8   : > { %p1319_p4 = pnand %p1317_p7, %p2153_p0 }
  0xa9   : > { %p1324_p13 = por %p1323_p9, %p1322_p1 }
  0xaa   : > { %p1320_p12 = pneg %p1319_p4 }
  0xab   : > { %p1326_p8 = por %p1325_p5, %p1324_p13 }
  0xad   : > { %p1327_p6 = pnand %p1326_p8, %p1320_p12 }
  0xaf   : > { %1330 = shalt.err (!%p1327_p6)
}
  0xb0   : > { %s1331_s9 = scalar_lea.vmem %s1809_s24, 256  ;;  %p2154_p11 = pmov %p2153_p0 }
  0xb1   : > { %p1332_p10 = scmp.ne.s32.totalorder %s1809_s24, %s1331_s9  ;;  %s1516_s16 = smov [#allocation10]  }
  0xb2   : > { %s1336_s28 = sshll.u32 %s1516_s16, 4  ;;  %s1337_s28 = int_to_ptr.vmem [resolvable:$false] %s1336_s28 }
  0xb3   : > { %p1334_p3 = pnand %p1332_p10, %p2154_p11  ;;  %s1338_s30 = scalar_lea.vmem %s1337_s28, 512 }
  0xb4   : > { %p1339_p0 = scmp.lt.s32.totalorder %s1809_s24, %s1337_s28  ;;  %p1340_p4 = scmp.lt.s32.totalorder %s1338_s30, %s1331_s9 }
  0xb5   : > { %p1335_p7 = pneg %p1334_p3 }
  0xb6   : > { %p1341_p1 = por %p1340_p4, %p1339_p0 }
  0xb8   : > { %p1342_p9 = pnand %p1341_p1, %p1335_p7 }
  0xba   : > { %1345 = shalt.err (!%p1342_p9)
}
  0xbb   : > { %1086 = dma.hbm_to_vmem [thread:$0]  (!%p2152_p2), %s1773_s10, 256, %s1809_s24, %s1777_s20, %s2149_s27, %s2149_s27, %s2148_s23  }
  0xbc   : > { %p2155_p12 = scmp.ne.s32.totalorder %s2137_s12, 0 }
  0xbd   : > { %s1913_s14 = sand.u32 (!%p2155_p12), 1, %s1484_s25   ;;  %p2156_p13 = scmp.ne.s32.totalorder (!%p2155_p12), %s2126_s15, 0 }
  0xbe   : > { %390 = sbr.rel (%p2155_p12) target bundleno = 984 (0x3d8), region = 40  ;;  %s1916_s19 = sshll.u32 (!%p2155_p12), %s1913_s14, 4 }
  0xbf   : > { %s393_s1 = scalar_lea.sflag (!%p2155_p12), [#allocation3], %s1913_s14  ;;  %s396_s11 = scalar_lea.vmem (!%p2155_p12), [#allocation2], %s1916_s19 }
  0xc5   : > { %1447 = dma.done.wait (%p2156_p13), %s393_s1, 256  }
  0xc6   : > { %1449 = vsyncadd (%p2156_p13), %s393_s1, 4294967040  ;;  %s401_s12 = sand.u32 1, %s1612_s8   ;;  %s405_s10 = scalar_lea.vmem [#allocation5], %s1916_s19 }
  0xc7   : > { %s402_s20 = scalar_lea.sflag [#allocation6], %s401_s12 }
  0xc8   : > { %1451 = dma.done.wait (%p2156_p13), %s402_s20, 512  }
  0xc9   : > { %1453 = vsyncadd (%p2156_p13), %s402_s20, 4294966784  ;;  %s2157_s23 = sld [smem:[#allocation19_spill]]  ;;  %s2158_s27 = sld [smem:[#allocation32_spill]] }
  0xca   : > { %s414_s29 = scalar_lea.vmem [#allocation7], %s1916_s19  ;;  %s420_s6 = scalar_lea.sflag [#allocation9], %s401_s12 }
  0xcf   : > { %s421_s24 = sand.u32 1, %s2157_s23   ;;  %p2159_p2 = scmp.ne.s32.totalorder %s2158_s27, 0 }
  0xd0   : > { %s1931_s13 = sshll.u32 %s421_s24, 4 }
  0xd1   : > { %s423_s5 = scalar_lea.vmem [#allocation8], %s1931_s13 }
  0xd2   : > { %1455 = dma.done.wait (%p2159_p2), %s420_s6, 512  }
  0xd3   : > { %1457 = vsyncadd (%p2159_p2), %s420_s6, 4294966784  ;;  %vm501_vm0 = vcmask 130048   ;;  %v495_v0 = vld [vmem:[%s405_s10] sm:$0xff]  ;;  %v496_v1 = vld [vmem:[%s405_s10 + $0x8] sm:$0xff]  ;;  %s432_s8 = scalar_lea.vmem [#allocation10], %s1931_s13  ;;  %s2160_s15 = sld [smem:[#allocation22_spill]] }
  0xd4   : > { %vm1048_vm1 = vmpackc.low %vm501_vm0, %vm501_vm0  ;;  %v491_v2 = vld [vmem:[%s396_s11] sm:$0xff]  ;;  %v1047_v3 = vpack.c.bf16 %v496_v1, %v495_v0  ;;  %v492_v5 = vld [vmem:[%s396_s11 + $0x8] sm:$0xff]  ;;  %s2161_s21 = sld [smem:[#allocation23_spill]]  ;;  %s485_s18 = scalar_lea.vmem [#allocation12], %s1916_s19 }
  0xd5   : > { %v493_v4 = vmul.f32 0.25, %v491_v2  ;;  %v494_v6 = vmul.f32 0.25, %v492_v5  ;;  %v498_v7 = vld [vmem:[%s423_s5 + $0x8] sm:$0xff]  ;;  %v497_v8 = vld [vmem:[%s423_s5] sm:$0xff]  ;;  %s2162_s22 = sld [smem:[#allocation28_spill]]  ;;  %s2163_s1 = sld [smem:[#allocation36_spill]] }
  0xd6   : > { %1049 = vmatprep.subr.msk.bf16.mxu0 %vm1048_vm1, %v1047_v3  ;;  %v500_v9 = vmul.f32 -1e+09, %v498_v7  ;;  %v499_v10 = vmul.f32 -1e+09, %v497_v8  ;;  %v589_v13 = vld [vmem:[%s432_s8] sm:$0xff]  ;;  %v590_v16 = vld [vmem:[%s432_s8 + $0x8] sm:$0xff] }
  0xd7   : > { %1037 = vmatprep.mubr.msk.f32.mxu0 %vm501_vm0, %v493_v4  ;;  %1052 = vmatpush3.bf16.xpose.msk.msra.mxu0 %vm1048_vm1, %v1047_v3  ;;  %v617_v31 = vld [vmem:[%s414_s29] sm:$0xff]  ;;  %v618_v32 = vld [vmem:[%s414_s29 + $0x8] sm:$0xff]  ;;  %s745_s12 = sshll.u32 %s485_s18, 4  ;;  %s708_s20 = scalar_lea.sflag [#allocation13], %s1913_s14  ;;  %s1969_s12 = int_to_ptr.vmem [resolvable:$true] %s745_s12 }
  0xd8   : > { %v1053_v33 = vpack.c.bf16 %v618_v32, %v617_v31  ;;  %s1346_s10 = scalar_lea.vmem %s1969_s12, 256  ;;  %s1517_s23 = smov [#allocation12]  }
  0xd9   : > { %s1015_s17 = sshll.u32 %s2160_s15, 1  ;;  %p1347_p5 = scmp.ne.s32.totalorder %s1969_s12, %s1346_s10 }
  0xda   : > { %1054 = vmatprep.subr.bf16.mxu1 %v1053_v33  ;;  %s1016_s3 = sshll.u32 %s2161_s21, 3  ;;  %s1350_s27 = sshll.u32 %s1517_s23, 4  ;;  %s1351_s27 = int_to_ptr.vmem [resolvable:$false] %s1350_s27 }
  0xdb   : > { %1056 = vmatpush3.bf16.msra.mxu1 %v1053_v33  ;;  %s1959_s9 = sadd.s32 %s1016_s3, %s1015_s17  ;;  %p2164_p8 = scmp.ne.s32.totalorder %s2162_s22, 0 }
  0xdc   : > { %s1017_s16 = sshll.u32 %s1959_s9, 7  ;;  %s1352_s24 = scalar_lea.vmem %s1351_s27, 512 }
  0xdd   : > { %s1967_s11 = scalar_lea.hbm %s2163_s1, %s1017_s16  ;;  %p1348_p6 = pnand %p1347_p5, %p2164_p8 }
  0xde   : > { %1038 = vmatmul.mubr.msk.f32.vlgmr.msra.gmra.mrb[0].mxu0 %vm501_vm0, %v494_v6  ;;  %p1353_p11 = scmp.lt.s32.totalorder %s1969_s12, %s1351_s27  ;;  %p1354_p3 = scmp.lt.s32.totalorder %s1352_s24, %s1346_s10 }
  0xdf   : > { %p1349_p10 = pneg %p1348_p6 }
  0xe0   : > { %p1355_p7 = por %p1354_p3, %p1353_p11 }
  0xe2   : > { %p1356_p0 = pnand %p1355_p7, %p1349_p10 }
 0x1b1   : > { %v1039_v11 = vpop.f32.mrb[0].mxu0 }
 0x1b2   : > { %v580_v12 = vpop.f32.mrb[1].mxu0  ;;  %v586_v14 = vadd.f32 %v1039_v11, %v500_v9 }
 0x1b3   : > { %v581_v15 = vadd.f32 %v580_v12, %v499_v10 }
 0x1b4   : > { %v592_v19 = vmul.f32 %v590_v16, %v586_v14 }
 0x1b5   : > { %v591_v17 = vmul.f32 %v589_v13, %v581_v15 }
 0x1b6   : > { %v596_v20 = vsel %vm501_vm0, %v592_v19, -inf }
 0x1b7   : > { %v593_v18 = vsel %vm501_vm0, %v591_v17, -inf }
 0x1b8   : > { %594 = vmax.xlane.f32.xlu0 %v593_v18 }
 0x1bc   : > { %597 = vmax.xlane.f32.xlu0 %v596_v20 }
 0x245   : > { %v595_v21 = vpop.xlane.xlu0 %594 }
 0x246   : > { %v599_v22 = vsub.f32 %v591_v17, %v595_v21 }
 0x248   : > { %v601_v23 = vmul.f32 1.442695, %v599_v22 }
 0x249   : > { %v598_v24 = vpop.xlane.xlu0 %597 }
 0x24a   : > { %1188 = vpow2.f32 %v601_v23  ;;  %v600_v25 = vsub.f32 %v592_v19, %v598_v24 }
 0x24c   : > { %v603_v26 = vmul.f32 1.442695, %v600_v25 }
 0x24e   : > { %1190 = vpow2.f32 %v603_v26 }
 0x254   : > { %v1189_v27 = vpop.eup %1188 }
 0x255   : > { %v605_v28 = vsel %vm501_vm0, %v1189_v27, 0.0 }
 0x256   : > { %606 = vadd.xlane.f32.xlu1 %v605_v28 }
 0x258   : > { %v1191_v29 = vpop.eup %1190 }
 0x259   : > { %v608_v30 = vsel %vm501_vm0, %v1191_v29, 0.0 }
 0x25a   : > { %609 = vadd.xlane.f32.xlu1 %v608_v30 }
 0x2e3   : > { %v607_v34 = vpop.xlane.xlu1 %606 }
 0x2e4   : > { %1192 = vrcp.f32 %v607_v34 }
 0x2e7   : > { %v610_v35 = vpop.xlane.xlu1 %609 }
 0x2e8   : > { %1194 = vrcp.f32 %v610_v35 }
 0x2ee   : > { %v1193_v36 = vpop.eup %1192 }
 0x2ef   : > { %v613_v37 = vmul.f32 %v1193_v36, %v1189_v27 }
 0x2f1   : > { %615 = vst.msk [vmem:[%s485_s18] sm:$0xff] %vm501_vm0, %v613_v37  ;;  %1044 = vmatprep.mubr.msk.f32.mxu1 %vm501_vm0, %v613_v37 }
 0x2f2   : > { %v1195_v38 = vpop.eup %1194 }
 0x2f3   : > { %v614_v39 = vmul.f32 %v1195_v38, %v1191_v29 }
 0x2f5   : > { %1045 = vmatmul.mubr.msk.f32.vlgmr.msra.gmra.mrb[0].mxu1 %vm501_vm0, %v614_v39  ;;  %616 = vst.msk [vmem:[%s485_s18 + $0x8] sm:$0xff] %vm501_vm0, %v614_v39 }
 0x2f6   : > { %1359 = shalt.err (!%p1356_p0)
}
 0x2f7   : > { %s1360_s13 = scalar_lea.hbm %s1967_s11, 256  ;;  %s1364_s5 = scalar_lea.hbm %s2163_s1, 2048 }
 0x2f8   : > { %p1361_p4 = scmp.ne.s32.totalorder %s1967_s11, %s1360_s13  ;;  %p1365_p12 = scmp.lt.u32.totalorder %s1967_s11, %s2163_s1 }
 0x2f9   : > { %p1366_p13 = scmp.lt.u32.totalorder %s1364_s5, %s1360_s13  ;;  %p1368_p5 = scmp.lt.u32.totalorder %s1360_s13, %s1967_s11 }
 0x2fa   : > { %p1362_p1 = pnand %p1361_p4, %p2164_p8 }
 0x2fb   : > { %p1367_p2 = por %p1366_p13, %p1365_p12 }
 0x2fc   : > { %p1363_p9 = pneg %p1362_p1 }
 0x2fd   : > { %p1369_p6 = por %p1368_p5, %p1367_p2 }
 0x2ff   : > { %p1370_p10 = pnand %p1369_p6, %p1363_p9 }
 0x301   : > { %1373 = shalt.err (!%p1370_p10)
}
 0x302   : > { %s1518_s21 = smov 128   ;;  %s1519_s18 = smov 8  }
 0x303   : > { %1068 = dma.vmem_to_hbm [thread:$0]  (%p2164_p8), %s1969_s12, 256, %s1967_s11, %s708_s20, %s1518_s21, %s1518_s21, %s1519_s18  }
 0x304   : > { %s478_s17 = scalar_lea.vmem [#allocation11], %s1916_s19  ;;  %s2165_s10 = sld [smem:[#allocation35_spill]] }
 0x305   : > { %s725_s3 = sshll.u32 %s478_s17, 4  ;;  %s703_s11 = scalar_lea.sflag [#allocation4], %s1913_s14  ;;  %s1999_s3 = int_to_ptr.vmem [resolvable:$true] %s725_s3 }
 0x306   : > { %s1374_s19 = scalar_lea.vmem %s1999_s3, 256  ;;  %s1520_s12 = smov [#allocation11]  }
 0x307   : > { %p1375_p11 = scmp.ne.s32.totalorder %s1999_s3, %s1374_s19  ;;  %s1378_s20 = sshll.u32 %s1520_s12, 4  ;;  %s1379_s20 = int_to_ptr.vmem [resolvable:$false] %s1378_s20 }
 0x308   : > { %s1380_s9 = scalar_lea.vmem %s1379_s20, 512  ;;  %p1381_p0 = scmp.lt.s32.totalorder %s1999_s3, %s1379_s20 }
 0x309   : > { %p1376_p3 = pnand %p1375_p11, %p2164_p8  ;;  %p1382_p4 = scmp.lt.s32.totalorder %s1380_s9, %s1374_s19 }
 0x30a   : > { %s2006_s23 = scalar_lea.hbm %s2165_s10, %s1017_s16 }
 0x30b   : > { %p1377_p7 = pneg %p1376_p3  ;;  %p1383_p1 = por %p1382_p4, %p1381_p0 }
 0x30d   : > { %p1384_p9 = pnand %p1383_p1, %p1377_p7 }
 0x3c8   : > { %v1046_v40 = vpop.f32.mrb[0].mxu1 }
 0x3c9   : > { %701 = vst.msk [vmem:[%s478_s17 + $0x8] sm:$0xff] %vm501_vm0, %v1046_v40  ;;  %v691_v41 = vpop.f32.mrb[1].mxu1 }
 0x3ca   : > { %700 = vst.msk [vmem:[%s478_s17] sm:$0xff] %vm501_vm0, %v691_v41 }
 0x3cb   : > { %1387 = shalt.err (!%p1384_p9)
}
 0x3cc   : > { %s1388_s16 = scalar_lea.hbm %s2006_s23, 256  ;;  %s1392_s13 = scalar_lea.hbm %s2165_s10, 2048 }
 0x3cd   : > { %p1389_p12 = scmp.ne.s32.totalorder %s2006_s23, %s1388_s16  ;;  %p1393_p5 = scmp.lt.u32.totalorder %s2006_s23, %s2165_s10 }
 0x3ce   : > { %p1394_p6 = scmp.lt.u32.totalorder %s1392_s13, %s1388_s16  ;;  %p1396_p11 = scmp.lt.u32.totalorder %s1388_s16, %s2006_s23 }
 0x3cf   : > { %p1390_p13 = pnand %p1389_p12, %p2164_p8 }
 0x3d0   : > { %p1395_p10 = por %p1394_p6, %p1393_p5 }
 0x3d1   : > { %p1391_p2 = pneg %p1390_p13 }
 0x3d2   : > { %p1397_p3 = por %p1396_p11, %p1395_p10 }
 0x3d4   : > { %p1398_p7 = pnand %p1397_p3, %p1391_p2 }
 0x3d6   : > { %1401 = shalt.err (!%p1398_p7)
}
 0x3d7   : > { %1067 = dma.vmem_to_hbm [thread:$0]  (%p2164_p8), %s1999_s3, 256, %s2006_s23, %s703_s11, %s1518_s21, %s1518_s21, %s1519_s18  }
 0x3d8 PF: > { %s2166_s5 = sld [smem:[#allocation21_spill]]  ;;  %s2167_s8 = sld [smem:[#allocation29_spill]] }
 0x3d9   : > { %p1095_p0 = scmp.ge.s32.totalorder %s1508_s7, 2 }
 0x3de   : > { %s760_s15 = sand.u32 1, %s2166_s5   ;;  %p2168_p4 = scmp.ne.s32.totalorder %s2167_s8, 0 }
 0x3df   : > { %s761_s17 = scalar_lea.sflag [#allocation4], %s760_s15 }
 0x3e0   : > { %p1088_p1 = pnand %p1095_p0, %p2168_p4 }
 0x3e2   : > { %1459 = dma.done.wait (!%p1088_p1), %s761_s17, 256  }
 0x3e3   : > { %1461 = vsyncadd (!%p1088_p1), %s761_s17, 4294967040  ;;  %s770_s22 = scalar_lea.sflag [#allocation13], %s760_s15 }
 0x3e4   : > { %1463 = dma.done.wait (!%p1088_p1), %s770_s22, 256  }
 0x3e5   : > { %1465 = vsyncadd (!%p1088_p1), %s770_s22, 4294967040  ;;  %s32_s7 = sadd.s32 1, %s1508_s7   ;;  %s2169_s21 = sld [smem:[#allocation19_spill]] }
 0x3e6   : > { %p29_p9 = scmp.ge.s32.totalorder %s32_s7, 10   ;;  %s2170_s22 = sld [smem:[#allocation20_spill]] }
 0x3e7   : > { %s2171_s23 = sld [smem:[#allocation31_spill]]  ;;  %s2172_s14 = sld [smem:[#allocation30_spill]] }
 0x3e8   : > { %s2173_s27 = sld [smem:[#allocation24_spill]]  ;;  %s2174_s28 = sld [smem:[#allocation25_spill]] }
 0x3e9   : > { %s2175_s29 = sld [smem:[#allocation26_spill]]  ;;  %s2176_s30 = sld [smem:[#allocation27_spill]] }
 0x3ea   : > { %s2177_s24 = smov %s1484_s25  ;;  %s2178_s25 = smov %s1488_s26 }
 0x3eb   :  { %31 = sbr.rel (!%p29_p9) target bundleno = 20 (0x14), region = 150 }
 0x3ed   : > { %s2179_s26 = smov %s2172_s14 }
 0x3f2   :  { %775 = vsyncpa [#allocation3], 1 }
 0x3f3   :  { %777 = vsyncpa [#allocation3 + $0x1], 1 }
 0x3f4   :  { %778 = vsyncpa [#allocation6], 1 }
 0x3f5   :  { %780 = vsyncpa [#allocation6 + $0x1], 1 }
 0x3f6   :  { %781 = vsyncpa [#allocation9], 1 }
 0x3f7   :  { %783 = vsyncpa [#allocation9 + $0x1], 1 }
 0x3f8   :  { %784 = vsyncpa [#allocation4], 1 }
 0x3f9   :  { %786 = vsyncpa [#allocation4 + $0x1], 1 }
 0x3fa   :  { %787 = vsyncpa [#allocation13], 1 }
 0x3fb   :  { %789 = vsyncpa [#allocation13 + $0x1], 1 }

</bundles_post_ra>
